<compile_context>
chip_gen: v7x
topology: tpu7x:2x2x1
jax: 0.10.0
libtpu: 0.0.40
codegen_flags: <defaults>
</compile_context>

<pallas_src>
import jax
import jax.numpy as jnp
from jax.experimental import pallas as pl
from jax.experimental.pallas import tpu as pltpu


def _logreg_kernel(xT_ref, w_ref, b_ref, o_ref):
    # xT_ref: (N, TB) f32   features x samples, lane-dense along samples
    # w_ref : (N, 1)  f32   weight column (same block every step -> resident)
    # b_ref : (1, 1)  f32   bias scalar in SMEM
    # o_ref : (1, TB) f32   lane-dense output row
    prod = xT_ref[...] * w_ref[...]               # VPU: (N, TB) * (N, 1) broadcast
    z = jnp.sum(prod, axis=0, keepdims=True)      # XLU sublane reduce -> (1, TB)
    z = z + b_ref[0, 0]                           # scalar bias from SMEM
    o_ref[...] = jax.nn.sigmoid(z).astype(o_ref.dtype)


def _choose_tile(batch, n_inputs, tile_bytes=2 * 1024 * 1024):
    """Largest lane-aligned batch tile whose (N, TB) f32 block is ~tile_bytes.

    ~2 MiB per input tile keeps the double-buffered working set well inside the
    scoped VMEM defaults on all generations (16 MiB v5e / 32 MiB v6e, v7x).
    """
    tb = (tile_bytes // (4 * n_inputs)) // 128 * 128
    tb = max(128, tb)
    b_ceil = pl.cdiv(batch, 128) * 128
    return min(tb, b_ceil)


def logistic_regression_forward(x, weight, bias, *, tile_bytes=2 * 1024 * 1024):
    """x: (B, N) f32; weight: (1, N) f32 (nn.Linear layout); bias: (1,) f32.

    Returns sigmoid(x @ weight.T + bias) with shape (B, 1).
    """
    x = x.astype(jnp.float32)
    B, N = x.shape

    TB = _choose_tile(B, N, tile_bytes)
    G = pl.cdiv(B, TB)
    B_pad = G * TB

    # Lane-dense layout plumbing (wrapper-side, per perf review): pad the batch,
    # then transpose so each feature row of x^T is contiguous in HBM and every
    # block DMA moves full 128-lane rows.
    x_pad = jnp.pad(x, ((0, B_pad - B), (0, 0)))
    xT = x_pad.T                                        # (N, B_pad)

    w_col = weight.reshape(N, 1).astype(jnp.float32)    # (N, 1)
    b2d = bias.reshape(1, 1).astype(jnp.float32)        # (1, 1) -> SMEM scalar

    # TODO(synk): for very large n_inputs add a feature (K) grid axis marked
    # "arbitrary" with a VMEM accumulator so the (N, TB) tile stays in VMEM.

    out = pl.pallas_call(
        _logreg_kernel,
        out_shape=jax.ShapeDtypeStruct((1, B_pad), jnp.float32),
        grid_spec=pltpu.PrefetchScalarGridSpec(
            num_scalar_prefetch=0,
            grid=(G,),
            in_specs=[
                pl.BlockSpec((N, TB), lambda i: (0, i)),            # x^T tile
                pl.BlockSpec((N, 1), lambda i: (0, 0)),             # resident weight
                pl.BlockSpec(memory_space=pltpu.MemorySpace.SMEM),  # bias scalar
            ],
            out_specs=pl.BlockSpec((1, TB), lambda i: (0, i)),
        ),
        compiler_params=pltpu.CompilerParams(
            dimension_semantics=("parallel",),  # v7x: shard batch tiles over 2 TCs
        ),
    )(xT, w_col, b2d)

    return out[0, :B].reshape(B, 1)


if __name__ == "__main__":
    n_inputs = 2
    batch = 8

    key = jax.random.PRNGKey(0)
    kx, kw, kb = jax.random.split(key, 3)

    # Same parameter shapes as nn.Linear(n_inputs, 1).
    weight = jax.random.normal(kw, (1, n_inputs), dtype=jnp.float32) * 0.5
    bias = jax.random.normal(kb, (1,), dtype=jnp.float32) * 0.5
    x = jax.random.normal(kx, (batch, n_inputs), dtype=jnp.float32)

    yhat = logistic_regression_forward(x, weight, bias)
    yhat = jax.block_until_ready(yhat)

    # Pure-JAX reference check.
    ref = jax.nn.sigmoid(x @ weight.T + bias)
    assert yhat.shape == (batch, 1)
    assert jnp.allclose(yhat, ref, atol=1e-5, rtol=1e-5)

    print("KERNEL_OK")
</pallas_src>

<mosaic_0001>
module attributes {stable_mosaic.version = 11 : i64} {
  func.func @_logreg_kernel(%arg0: i32, %arg1: memref<2x128xf32, #tpu.memory_space<vmem>>, %arg2: memref<2x1xf32, #tpu.memory_space<vmem>>, %arg3: memref<1x1xf32, #tpu.memory_space<smem>>, %arg4: memref<1x128xf32, #tpu.memory_space<vmem>>) attributes {dimension_semantics = [#tpu.dimension_semantics<parallel>], iteration_bounds = array<i64: 1>, scalar_prefetch = 0 : i64, scratch_operands = 0 : i64, tpu.core_type = #tpu.core_type<tc>, window_params = [{transform_indices = @transform_0, window_bounds = array<i64: 2, 128>}, {pipeline_mode = #tpu.pipeline_mode<synchronous>, transform_indices = @transform_1, window_bounds = array<i64: 2, 1>}, {transform_indices = @transform_2, window_bounds = array<i64: 1, 1>}, {transform_indices = @transform_3, window_bounds = array<i64: 1, 128>}]} {
    %c0 = arith.constant 0 : index
    %c0_0 = arith.constant 0 : index
    %0 = vector.load %arg1[%c0, %c0_0] : memref<2x128xf32, #tpu.memory_space<vmem>>, vector<2x128xf32>
    %c0_1 = arith.constant 0 : index
    %c0_2 = arith.constant 0 : index
    %1 = vector.load %arg2[%c0_1, %c0_2] : memref<2x1xf32, #tpu.memory_space<vmem>>, vector<2x1xf32>
    %2 = vector.broadcast %1 : vector<2x1xf32> to vector<2x128xf32>
    %3 = arith.mulf %0, %2 : vector<2x128xf32>
    %cst = arith.constant dense<0.000000e+00> : vector<128xf32>
    %4 = vector.multi_reduction <add>, %3, %cst [0] : vector<2x128xf32> to vector<128xf32>
    %5 = vector.shape_cast %4 : vector<128xf32> to vector<1x128xf32>
    %c0_3 = arith.constant 0 : index
    %c0_4 = arith.constant 0 : index
    %6 = memref.load %arg3[%c0_3, %c0_4] : memref<1x1xf32, #tpu.memory_space<smem>>
    %7 = vector.broadcast %6 : f32 to vector<1x128xf32>
    %8 = arith.addf %5, %7 : vector<1x128xf32>
    %9 = arith.negf %8 : vector<1x128xf32>
    %10 = math.exp %9 : vector<1x128xf32>
    %cst_5 = arith.constant 1.000000e+00 : f32
    %11 = vector.broadcast %cst_5 : f32 to vector<1x128xf32>
    %12 = arith.addf %11, %10 : vector<1x128xf32>
    %13 = arith.divf %11, %12 : vector<1x128xf32>
    %c0_6 = arith.constant 0 : index
    %c0_7 = arith.constant 0 : index
    %14 = vector.load %arg4[%c0_6, %c0_7] : memref<1x128xf32, #tpu.memory_space<vmem>>, vector<1x128xf32>
    tpu.vector_store %arg4[%c0_6, %c0_7], %13 {strides = array<i32>} : memref<1x128xf32, #tpu.memory_space<vmem>>, vector<1x128xf32>,
    return
  }
  func.func @transform_0(%arg0: i32) -> (i32, i32) {
    %c0_i32 = arith.constant 0 : i32
    %c0_i32_0 = arith.constant 0 : i32
    return %c0_i32, %arg0 : i32, i32
  }
  func.func @transform_1(%arg0: i32) -> (i32, i32) {
    %c0_i32 = arith.constant 0 : i32
    %c0_i32_0 = arith.constant 0 : i32
    %c0_i32_1 = arith.constant 0 : i32
    return %c0_i32, %c0_i32_0 : i32, i32
  }
  func.func @transform_2(%arg0: i32) -> (i32, i32) {
    %c0_i32 = arith.constant 0 : i32
    %c0_i32_0 = arith.constant 0 : i32
    %c0_i32_1 = arith.constant 0 : i32
    return %c0_i32, %c0_i32_0 : i32, i32
  }
  func.func @transform_3(%arg0: i32) -> (i32, i32) {
    %c0_i32 = arith.constant 0 : i32
    %c0_i32_0 = arith.constant 0 : i32
    return %c0_i32, %arg0 : i32, i32
  }
}

</mosaic_0001>

<bundles_post_ra>
// kernel: tpu_custom_call.1
= control target key start
LH: loop header
LB: loop body
LE: loop exit
PB: predicated region body
PF: predicated region fallthrough
CT: control target
= control target key end

     0   :  { %s131_s0 = inlined_call_operand.vmem [shape: f32[2,128], index: 0, kind: input, shape index: {}]   ;;  %s132_s1 = inlined_call_operand.vmem [shape: f32[2,1], index: 1, kind: input, shape index: {}]   ;;  %s133_s2 = inlined_call_operand.<no memory space> [shape: f32[1,1], index: 2, kind: input, shape index: {}]   ;;  %s134_s3 = inlined_call_operand.hbm [shape: f32[1,128], index: 3, kind: output, shape index: {}]  }
   0x1   :  { %v17_v0 = vld [vmem:[%s132_s1] sm:$0x3] }
   0x2   :  { %9 = vsyncpa [#allocation4], 0  ;;  %v88_v1 = vmov 0   ;;  %v16_v2 = vld [vmem:[%s131_s0] sm:$0x3]  ;;  %vm24_vm0 = vcmask 1041408   ;;  %v33_v11 = vstv %s133_s2 }
   0x3   :  { %59 = vset.pattern.permute.xlu0 %v88_v1  ;;  %s89_s0 = smov [#allocation3]  }
   0x4   :  { %20 = vperm.xlu0 %59, %v17_v0   ;;  %s48_s1 = sshll.u32 %s89_s0, 4  ;;  %s49_s1 = int_to_ptr.vmem [resolvable:$true] %s48_s1 }
   0x5   :  { %s64_s18 = scalar_lea.vmem %s49_s1, 16  ;;  %s68_s19 = scalar_lea.vmem %s49_s1, 32 }
   0x6   :  { %p65_p0 = scmp.ne.s32.totalorder %s49_s1, %s64_s18  ;;  %p69_p1 = scmp.lt.s32.totalorder %s49_s1, %s49_s1 }
   0x7   :  { %p70_p2 = scmp.lt.s32.totalorder %s68_s19, %s64_s18 }
   0x9   :  { %p71_p3 = por %p70_p2, %p69_p1 }
   0xb   :  { %p72_p4 = pnand %p71_p3, %p65_p0 }
  0x83   :  { %v21_v3 = vpop.permute.xlu0 %20 }
  0x84   :  { %v23_v4 = vmul.f32 %v21_v3, %v16_v2 }
  0x86   :  { %v25_v5 = vsel %vm24_vm0, %v23_v4, 0.0 }
  0x87   :  { %v26_v6 = vrot.slane %v25_v5, 4 }
  0x89   :  { %v27_v7 = vadd.f32 %v26_v6, %v25_v5 }
  0x8b   :  { %v28_v8 = vrot.slane %v27_v7, 2 }
  0x8d   :  { %v29_v9 = vadd.f32 %v28_v8, %v27_v7 }
  0x8f   :  { %v30_v10 = vrot.slane %v29_v9, 1 }
  0x91   :  { %v31_v12 = vadd.f32 %v30_v10, %v29_v9 }
  0x93   :  { %v34_v13 = vadd.f32 %v33_v11, %v31_v12 }
  0x95   :  { %v56_v14 = vmul.f32 -1.442695, %v34_v13 }
  0x97   :  { %60 = vpow2.f32 %v56_v14 }
  0xa1   :  { %v61_v15 = vpop.eup %60 }
  0xa2   :  { %v38_v16 = vadd.f32 1.0, %v61_v15 }
  0xa4   :  { %62 = vrcp.f32 %v38_v16 }
  0xae   :  { %v63_v17 = vpop.eup %62 }
  0xaf   :  { %41 = vst [vmem:[#allocation3] sm:$0x1] %v63_v17 }
  0xb0   :  { %75 = shalt.err (!%p72_p4)
}
  0xb1   :  { %s76_s21 = scalar_lea.hbm %s134_s3, 16 }
  0xb2   :  { %p77_p5 = scmp.ne.s32.totalorder %s134_s3, %s76_s21  ;;  %p80_p6 = scmp.lt.u32.totalorder %s76_s21, %s134_s3 }
  0xb4   :  { %p82_p7 = pnand %p80_p6, %p77_p5 }
  0xb6   :  { %85 = shalt.err (!%p82_p7)
}
  0xb7   :  { %51 = dma.vmem_to_hbm [thread:$0]  %s49_s1, 16, %s134_s3, [#allocation4]  }
  0xb8   :  { %86 = dma.done.wait [#allocation4], 16  }
  0xb9   :  { %87 = vsyncadd [#allocation4], 4294967280 }
  0xba   :  { %55 = vsyncpa [#allocation4], 1 }

</bundles_post_ra>
